<compile_context>
chip_gen: v6e
topology: v6e:2x2x1
jax: 0.10.0
libtpu: 0.0.40
codegen_flags: <defaults>
</compile_context>

<pallas_src>
import functools

import jax
import jax.numpy as jnp
from jax import lax
from jax.experimental import pallas as pl
from jax.experimental.pallas import tpu as pltpu

_LANE = 128          # vreg lane width
_MAX_TILE_R = 8192   # up to 4 MiB f32 per input per grid step (24 MiB double-buffered)
_CHUNK_R = 256       # rows folded per inner-loop iteration (bounds live temporaries)
_MIN_BLOCKS = 4      # keep >= 2x TensorCores of blocks for v7x megacore balance
_MIN_TILE_R = 1024   # only enforce _MIN_BLOCKS once the input is large enough


def _round_up(x, m):
    return ((x + m - 1) // m) * m


def _sums_jax(o, t, m):
    """Pure-JAX partial sums (used for tiny inputs and the <128-elem tail)."""
    o = o.astype(jnp.float32)
    t = t.astype(jnp.float32)
    m = m.astype(jnp.float32)
    loss = jnp.sum(jnp.abs(o * m - t * m))
    cnt = jnp.sum((m != 0.0).astype(jnp.float32))
    return loss, cnt


def _kp_loss_kernel(o_ref, t_ref, m_ref, part_ref, *, n_rows, tile_r, chunk_r):
    """Per-block partial sums.

    part_ref is a (16, 128) f32 block:
      sublanes 0..7  : partial sum of |o*m - t*m|
      sublanes 8..15 : partial count of (mask != 0)
    """
    n_chunks = tile_r // chunk_r
    block_row0 = pl.program_id(0) * tile_r

    def chunk_partials(c, mask_rows):
        r0 = pl.multiple_of(c * chunk_r, chunk_r)
        o = o_ref[pl.ds(r0, chunk_r), :].astype(jnp.float32)
        t = t_ref[pl.ds(r0, chunk_r), :].astype(jnp.float32)
        m = m_ref[pl.ds(r0, chunk_r), :].astype(jnp.float32)
        # Exact PyTorch formula (keeps rounding identical for non-binary masks).
        absdiff = jnp.abs(o * m - t * m)
        cnt = (m != 0.0).astype(jnp.float32)
        if mask_rows:
            # Only compiled for the ragged last block: rows past n_rows hold
            # unspecified data; zero their contribution.  (chunk_r, 1) iota
            # keeps the mask cheap.
            rows = (block_row0 + r0
                    + lax.broadcasted_iota(jnp.int32, (chunk_r, 1), 0))
            valid = rows < n_rows
            absdiff = jnp.where(valid, absdiff, 0.0)
            cnt = jnp.where(valid, cnt, 0.0)
        # Sublane-aligned fold of the chunk into one (8, 128) vreg each.
        fold = lambda x: jnp.sum(x.reshape(chunk_r // 8, 8, _LANE), axis=0)
        return fold(absdiff), fold(cnt)

    def compute(mask_rows):
        def body(c, carry):
            acc_l, acc_c = carry
            dl, dc = chunk_partials(c, mask_rows)
            return acc_l + dl, acc_c + dc

        zero = jnp.zeros((8, _LANE), jnp.float32)
        acc_l, acc_c = lax.fori_loop(0, n_chunks, body, (zero, zero))
        part_ref[0:8, :] = acc_l
        part_ref[8:16, :] = acc_c

    if n_rows % tile_r == 0:
        # Every block is full: no edge masking anywhere (hot path).
        compute(mask_rows=False)
    else:
        last = pl.num_programs(0) - 1

        @pl.when(pl.program_id(0) != last)
        def _():
            compute(mask_rows=False)

        @pl.when(pl.program_id(0) == last)
        def _():
            compute(mask_rows=True)


def reg_l1_kp_loss(output, target, mask):
    """JAX/Pallas equivalent of RegL1KpLoss.forward(output, target, mask)."""
    assert output.shape == target.shape == mask.shape
    total = output.size

    o_flat = output.reshape(-1)
    t_flat = target.reshape(-1)
    m_flat = mask.reshape(-1)

    n_full = (total // _LANE) * _LANE
    n_rows = n_full // _LANE

    # Packed-sublane multiple: 8 for 4-byte, 16 for 2-byte, 32 for 1-byte dtypes.
    sub = max(32 // jnp.dtype(x.dtype).itemsize for x in (output, target, mask))

    if n_rows < sub:
        # Smaller than one packed sublane tile: pure JAX is strictly faster.
        loss_sum, cnt_sum = _sums_jax(o_flat, t_flat, m_flat)
        return loss_sum / (cnt_sum + 0.0001)

    # ---- row-tile selection ----------------------------------------------
    # Largest tile that (a) is a packed-sublane multiple, (b) does not exceed
    # the row count, (c) is capped at _MAX_TILE_R, (d) leaves >= _MIN_BLOCKS
    # blocks on large inputs (v7x megacore balance), and (e) is a multiple of
    # the inner chunk so the fold loop divides evenly.
    tile_r = min(_MAX_TILE_R, (n_rows // sub) * sub)
    if n_rows > _MIN_BLOCKS * _MIN_TILE_R:
        tile_r = min(tile_r, _round_up(pl.cdiv(n_rows, _MIN_BLOCKS), sub))
    if tile_r >= _CHUNK_R:
        tile_r = (tile_r // _CHUNK_R) * _CHUNK_R   # _CHUNK_R is a multiple of 32
        chunk_r = _CHUNK_R
    else:
        chunk_r = tile_r
    n_blocks = pl.cdiv(n_rows, tile_r)

    # Lane-dense views of the 128-aligned prefix, kept in the native dtype
    # (no wrapper pad / cast copies).
    o2 = o_flat[:n_full].reshape(n_rows, _LANE)
    t2 = t_flat[:n_full].reshape(n_rows, _LANE)
    m2 = m_flat[:n_full].reshape(n_rows, _LANE)

    kernel = functools.partial(_kp_loss_kernel, n_rows=n_rows, tile_r=tile_r,
                               chunk_r=chunk_r)

    in_spec = pl.BlockSpec((tile_r, _LANE), lambda i: (i, 0))
    out_spec = pl.BlockSpec((None, 16, _LANE), lambda i: (i, 0, 0))

    itemsizes = sum(jnp.dtype(x.dtype).itemsize for x in (output, target, mask))
    buf_bytes = 2 * tile_r * _LANE * itemsizes          # double-buffered inputs
    vmem_limit = int(min(48 << 20, max(32 << 20, buf_bytes + (8 << 20))))

    parts = pl.pallas_call(
        kernel,
        out_shape=jax.ShapeDtypeStruct((n_blocks, 16, _LANE), jnp.float32),
        grid=(n_blocks,),
        in_specs=[in_spec, in_spec, in_spec],
        out_specs=out_spec,
        compiler_params=pltpu.CompilerParams(
            dimension_semantics=("parallel",),   # independent blocks -> megacore OK
            vmem_limit_bytes=vmem_limit,
        ),
        cost_estimate=pl.CostEstimate(
            flops=8 * n_full,
            transcendentals=0,
            bytes_accessed=n_rows * _LANE * itemsizes + n_blocks * 16 * _LANE * 4,
        ),
    )(o2, t2, m2)

    # Tiny epilogue: one reduce over the packed partials, then the division.
    per_sublane = jnp.sum(parts, axis=(0, 2))   # (16,)
    loss_sum = jnp.sum(per_sublane[:8])
    cnt_sum = jnp.sum(per_sublane[8:])

    if n_full != total:
        # <128-element tail handled in plain JAX (avoids a full jnp.pad copy).
        tl, tc = _sums_jax(o_flat[n_full:], t_flat[n_full:], m_flat[n_full:])
        loss_sum = loss_sum + tl
        cnt_sum = cnt_sum + tc

    return loss_sum / (cnt_sum + 0.0001)


def _reference(output, target, mask):
    output = output.astype(jnp.float32)
    target = target.astype(jnp.float32)
    mask = mask.astype(jnp.float32)
    loss = jnp.sum(jnp.abs(output * mask - target * mask))
    return loss / (jnp.sum((mask != 0).astype(jnp.float32)) + 0.0001)


if __name__ == "__main__":
    key = jax.random.PRNGKey(0)

    def make_inputs(shape, dtype, k):
        k1, k2, k3 = jax.random.split(k, 3)
        out = jax.random.normal(k1, shape, dtype=jnp.float32).astype(dtype)
        tgt = jax.random.normal(k2, shape, dtype=jnp.float32).astype(dtype)
        msk = (jax.random.uniform(k3, shape) > 0.7).astype(dtype)
        return out, tgt, msk

    cases = [
        ((2, 4, 16, 16), jnp.float32),   # lane-aligned, single full block
        ((2, 4, 17, 15), jnp.float32),   # non-lane-aligned -> ragged block + tail epilogue
        ((2, 4, 32, 32), jnp.bfloat16),  # bf16 path: native-dtype DMA, in-kernel cast
    ]
    keys = jax.random.split(key, len(cases))
    for (shape, dtype), k in zip(cases, keys):
        o, t, m = make_inputs(shape, dtype, k)
        loss = jax.block_until_ready(reg_l1_kp_loss(o, t, m))
        ref = _reference(o, t, m)
        assert jnp.allclose(loss, ref, rtol=1e-5, atol=1e-5), (shape, dtype, loss, ref)

    print("KERNEL_OK")
</pallas_src>

<mosaic_0001>
module attributes {stable_mosaic.version = 11 : i64} {
  func.func @_kp_loss_kernel(%arg0: i32, %arg1: memref<16x128xf32, #tpu.memory_space<vmem>>, %arg2: memref<16x128xf32, #tpu.memory_space<vmem>>, %arg3: memref<16x128xf32, #tpu.memory_space<vmem>>, %arg4: memref<1x16x128xf32, #tpu.memory_space<vmem>>) attributes {dimension_semantics = [#tpu.dimension_semantics<parallel>], iteration_bounds = array<i64: 1>, scalar_prefetch = 0 : i64, scratch_operands = 0 : i64, tpu.core_type = #tpu.core_type<tc>, window_params = [{transform_indices = @transform_0, window_bounds = array<i64: 16, 128>}, {transform_indices = @transform_1, window_bounds = array<i64: 16, 128>}, {transform_indices = @transform_2, window_bounds = array<i64: 16, 128>}, {transform_indices = @transform_3, window_bounds = array<i64: 1, 16, 128>}]} {
    %cst = arith.constant 0.000000e+00 : f32
    %0 = vector.broadcast %cst : f32 to vector<8x128xf32>
    %c0_i32 = arith.constant 0 : i32
    %c16_i32 = arith.constant 16 : i32
    %1 = arith.muli %c0_i32, %c16_i32 : i32
    %2 = tpu.assume_multiple %1, 16 : i32
    %3 = arith.index_cast %2 : i32 to index
    %c0 = arith.constant 0 : index
    %4 = vector.load %arg1[%3, %c0] : memref<16x128xf32, #tpu.memory_space<vmem>>, vector<16x128xf32>
    %5 = arith.index_cast %2 : i32 to index
    %c0_0 = arith.constant 0 : index
    %6 = vector.load %arg2[%5, %c0_0] : memref<16x128xf32, #tpu.memory_space<vmem>>, vector<16x128xf32>
    %7 = arith.index_cast %2 : i32 to index
    %c0_1 = arith.constant 0 : index
    %8 = vector.load %arg3[%7, %c0_1] : memref<16x128xf32, #tpu.memory_space<vmem>>, vector<16x128xf32>
    %9 = arith.mulf %4, %8 : vector<16x128xf32>
    %10 = arith.mulf %6, %8 : vector<16x128xf32>
    %11 = arith.subf %9, %10 : vector<16x128xf32>
    %12 = math.absf %11 : vector<16x128xf32>
    %cst_2 = arith.constant 0.000000e+00 : f32
    %13 = vector.broadcast %cst_2 : f32 to vector<16x128xf32>
    %14 = arith.cmpf one, %8, %13 : vector<16x128xf32>
    %15 = arith.extui %14 : vector<16x128xi1> to vector<16x128xi32>
    %16 = arith.sitofp %15 : vector<16x128xi32> to vector<16x128xf32>
    %17 = vector.shape_cast %12 : vector<16x128xf32> to vector<2x8x128xf32>
    %cst_3 = arith.constant dense<0.000000e+00> : vector<8x128xf32>
    %18 = vector.multi_reduction <add>, %17, %cst_3 [0] : vector<2x8x128xf32> to vector<8x128xf32>
    %19 = vector.shape_cast %16 : vector<16x128xf32> to vector<2x8x128xf32>
    %cst_4 = arith.constant dense<0.000000e+00> : vector<8x128xf32>
    %20 = vector.multi_reduction <add>, %19, %cst_4 [0] : vector<2x8x128xf32> to vector<8x128xf32>
    %21 = arith.addf %0, %18 : vector<8x128xf32>
    %22 = arith.addf %0, %20 : vector<8x128xf32>
    %c1_i32 = arith.constant 1 : i32
    %c0_5 = arith.constant 0 : index
    %c0_6 = arith.constant 0 : index
    %c0_7 = arith.constant 0 : index
    %23 = vector.load %arg4[%c0_5, %c0_6, %c0_7] : memref<1x16x128xf32, #tpu.memory_space<vmem>>, vector<1x8x128xf32>
    %24 = vector.shape_cast %23 : vector<1x8x128xf32> to vector<8x128xf32>
    %25 = vector.shape_cast %21 : vector<8x128xf32> to vector<1x8x128xf32>
    tpu.vector_store %arg4[%c0_5, %c0_6, %c0_7], %25 {strides = array<i32>} : memref<1x16x128xf32, #tpu.memory_space<vmem>>, vector<1x8x128xf32>,
    %c0_8 = arith.constant 0 : index
    %c8 = arith.constant 8 : index
    %c0_9 = arith.constant 0 : index
    %26 = vector.load %arg4[%c0_8, %c8, %c0_9] : memref<1x16x128xf32, #tpu.memory_space<vmem>>, vector<1x8x128xf32>
    %27 = vector.shape_cast %26 : vector<1x8x128xf32> to vector<8x128xf32>
    %28 = vector.shape_cast %22 : vector<8x128xf32> to vector<1x8x128xf32>
    tpu.vector_store %arg4[%c0_8, %c8, %c0_9], %28 {strides = array<i32>} : memref<1x16x128xf32, #tpu.memory_space<vmem>>, vector<1x8x128xf32>,
    return
  }
  func.func @transform_0(%arg0: i32) -> (i32, i32) {
    %c0_i32 = arith.constant 0 : i32
    %c0_i32_0 = arith.constant 0 : i32
    return %arg0, %c0_i32 : i32, i32
  }
  func.func @transform_1(%arg0: i32) -> (i32, i32) {
    %c0_i32 = arith.constant 0 : i32
    %c0_i32_0 = arith.constant 0 : i32
    return %arg0, %c0_i32 : i32, i32
  }
  func.func @transform_2(%arg0: i32) -> (i32, i32) {
    %c0_i32 = arith.constant 0 : i32
    %c0_i32_0 = arith.constant 0 : i32
    return %arg0, %c0_i32 : i32, i32
  }
  func.func @transform_3(%arg0: i32) -> (i32, i32, i32) {
    %c0_i32 = arith.constant 0 : i32
    %c0_i32_0 = arith.constant 0 : i32
    %c0_i32_1 = arith.constant 0 : i32
    return %arg0, %c0_i32, %c0_i32_0 : i32, i32, i32
  }
}

</mosaic_0001>

<bundles_post_ra>
// kernel: tpu_custom_call.1
= control target key start
LH: loop header
LB: loop body
LE: loop exit
PB: predicated region body
PF: predicated region fallthrough
CT: control target
= control target key end

     0   :  { %8 = vsyncpa [#allocation3], 0  ;;  %s246_s0 = inlined_call_operand.hbm [shape: f32[16,128], index: 0, kind: input, shape index: {}]   ;;  %s247_s1 = inlined_call_operand.hbm [shape: f32[16,128], index: 1, kind: input, shape index: {}]   ;;  %s248_s2 = inlined_call_operand.hbm [shape: f32[16,128], index: 2, kind: input, shape index: {}]   ;;  %s249_s3 = inlined_call_operand.hbm [shape: f32[1,16,128], index: 3, kind: output, shape index: {}]  }
   0x1   :  { %9 = vsyncpa [#allocation6], 0 }
   0x2   :  { %10 = vsyncpa [#allocation4], 0  ;;  %s195_s12 = smov [#allocation5]   ;;  %s196_s14 = smov [#allocation2]  }
   0x3   :  { %s28_s13 = sshll.u32 %s195_s12, 4  ;;  %s16_s15 = sshll.u32 %s196_s14, 4  ;;  %s29_s13 = int_to_ptr.vmem [resolvable:$true] %s28_s13  ;;  %s17_s15 = int_to_ptr.vmem [resolvable:$true] %s16_s15 }
   0x4   :  { %s117_s16 = scalar_lea.vmem %s29_s13, 256  ;;  %p122_p1 = scmp.lt.s32.totalorder %s29_s13, %s29_s13 }
   0x5   :  { %p118_p0 = scmp.ne.s32.totalorder %s29_s13, %s117_s16  ;;  %p123_p2 = scmp.lt.s32.totalorder %s117_s16, %s117_s16 }
   0x7   :  { %p124_p3 = por %p123_p2, %p122_p1 }
   0x9   :  { %p125_p4 = pnand %p124_p3, %p118_p0 }
   0xb   :  { %128 = shalt.err (!%p125_p4)
}
   0xc   :  { %s197_s17 = smov 128   ;;  %s198_s18 = smov 8  }
   0xd   :  { %34 = dma.hbm_to_vmem [thread:$0]  %s247_s1, 256, %s29_s13, [#allocation6], %s197_s17, %s197_s17, %s198_s18  }
   0xe   :  { %s137_s21 = scalar_lea.vmem %s17_s15, 256  ;;  %p142_p6 = scmp.lt.s32.totalorder %s17_s15, %s17_s15 }
   0xf   :  { %p138_p5 = scmp.ne.s32.totalorder %s17_s15, %s137_s21  ;;  %p143_p7 = scmp.lt.s32.totalorder %s137_s21, %s137_s21 }
  0x11   :  { %p144_p8 = por %p143_p7, %p142_p6 }
  0x13   :  { %p145_p9 = pnand %p144_p8, %p138_p5 }
  0x15   :  { %148 = shalt.err (!%p145_p9)
}
  0x16   :  { %22 = dma.hbm_to_vmem [thread:$0]  %s246_s0, 256, %s17_s15, [#allocation3], %s197_s17, %s197_s17, %s198_s18  }
  0x17   :  { %s199_s24 = smov [#allocation7]  }
  0x18   :  { %s40_s25 = sshll.u32 %s199_s24, 4  ;;  %s41_s25 = int_to_ptr.vmem [resolvable:$true] %s40_s25 }
  0x19   :  { %s157_s26 = scalar_lea.vmem %s41_s25, 256  ;;  %p162_p11 = scmp.lt.s32.totalorder %s41_s25, %s41_s25 }
  0x1a   :  { %p158_p10 = scmp.ne.s32.totalorder %s41_s25, %s157_s26  ;;  %p163_p12 = scmp.lt.s32.totalorder %s157_s26, %s157_s26 }
  0x1c   :  { %p164_p13 = por %p163_p12, %p162_p11 }
  0x1e   :  { %p165_p0 = pnand %p164_p13, %p158_p10 }
  0x20   :  { %168 = shalt.err (!%p165_p0)
}
  0x21   :  { %46 = dma.hbm_to_vmem [thread:$0]  %s248_s2, 256, %s41_s25, [#allocation6], %s197_s17, %s197_s17, %s198_s18  }
  0x22   :  { %189 = dma.done.wait [#allocation3], 256  }
  0x23   :  { %190 = vsyncadd [#allocation3], 4294967040 }
  0x24   :  { %191 = dma.done.wait [#allocation6], 512  }
  0x25   :  { %192 = vsyncadd [#allocation6], 4294966784  ;;  %v56_v0 = vld [vmem:[#allocation2] sm:$0xff]  ;;  %v57_v1 = vld [vmem:[#allocation2 + $0x8] sm:$0xff]  ;;  %v200_v12 = vmov 0.0   ;;  %s201_s0 = smov [#allocation8]  }
  0x26   :  { %v58_v2 = vld [vmem:[#allocation5] sm:$0xff]  ;;  %v59_v3 = vld [vmem:[#allocation5 + $0x8] sm:$0xff]  ;;  %v60_v4 = vld [vmem:[#allocation7] sm:$0xff]  ;;  %s87_s2 = sshll.u32 %s201_s0, 4  ;;  %s88_s2 = int_to_ptr.vmem [resolvable:$true] %s87_s2 }
  0x27   :  { %v61_v5 = vld [vmem:[#allocation7 + $0x8] sm:$0xff]  ;;  %v62_v6 = vmul.f32 %v60_v4, %v56_v0  ;;  %v64_v8 = vmul.f32 %v60_v4, %v58_v2  ;;  %vm70_vm0 = vcmp.ne.f32.partialorder %v60_v4, 0.0  ;;  %s169_s28 = scalar_lea.vmem %s88_s2, 256  ;;  %p174_p2 = scmp.lt.s32.totalorder %s88_s2, %s88_s2 }
  0x28   :  { %v63_v7 = vmul.f32 %v61_v5, %v57_v1  ;;  %v65_v9 = vmul.f32 %v61_v5, %v59_v3  ;;  %vm71_vm1 = vcmp.ne.f32.partialorder %v61_v5, 0.0  ;;  %v100_v13 = vsel %vm70_vm0, 1.0, %v200_v12  ;;  %p170_p1 = scmp.ne.s32.totalorder %s88_s2, %s169_s28  ;;  %p175_p3 = scmp.lt.s32.totalorder %s169_s28, %s169_s28 }
  0x29   :  { %v66_v10 = vsub.f32 %v62_v6, %v64_v8  ;;  %v101_v14 = vsel %vm71_vm1, 1.0, %v200_v12 }
  0x2a   :  { %v67_v11 = vsub.f32 %v63_v7, %v65_v9  ;;  %v77_v15 = vadd.f32 %v101_v14, %v100_v13  ;;  %p176_p4 = por %p175_p3, %p174_p2 }
  0x2b   :  { %v68_v16 = vand.u32 2147483647, %v66_v10 }
  0x2c   :  { %v69_v17 = vand.u32 2147483647, %v67_v11  ;;  %81 = vst [vmem:[#allocation8 + $0x8] sm:$0xff] %v77_v15  ;;  %p177_p5 = pnand %p176_p4, %p170_p1 }
  0x2e   :  { %v76_v18 = vadd.f32 %v69_v17, %v68_v16 }
  0x30   :  { %80 = vst [vmem:[#allocation8] sm:$0xff] %v76_v18 }
  0x31   :  { %180 = shalt.err (!%p177_p5)
}
  0x32   :  { %93 = dma.vmem_to_hbm [thread:$0]  %s88_s2, 256, %s249_s3, [#allocation4], %s197_s17, %s197_s17, %s198_s18  }
  0x33   :  { %193 = dma.done.wait [#allocation4], 256  }
  0x34   :  { %194 = vsyncadd [#allocation4], 4294967040 }
  0x35   :  { %97 = vsyncpa [#allocation3], 1 }
  0x36   :  { %98 = vsyncpa [#allocation6], 1 }
  0x37   :  { %99 = vsyncpa [#allocation4], 1 }

</bundles_post_ra>
